<compile_context>
chip_gen: v5e
topology: v5e:2x2
jax: 0.10.0
libtpu: 0.0.40
codegen_flags: <defaults>
</compile_context>

<pallas_src>
import functools
import math

import jax
import jax.numpy as jnp
from jax import lax
from jax.experimental import pallas as pl
from jax.experimental.pallas import tpu as pltpu


# ------------------------------ fused kernel ------------------------------- #
def _nmt_fused_kernel(src_emb_ref, tgt_emb_ref,
                      w_enc_ref, b_enc_ref,
                      w_q_ref, w_ch_ref, b_dec_ref,
                      w_gen_ref, b_gen_ref,
                      out_ref):
    """One grid step = one batch element (encoder + attention + generator)."""
    bf16 = jnp.bfloat16

    # ---- encoder: attn_src = tanh(emb @ W_enc + b_enc) ----        (S, H)
    enc = jnp.tanh(
        jnp.dot(src_emb_ref[...], w_enc_ref[...],
                preferred_element_type=jnp.float32) + b_enc_ref[...])

    # ---- decoder: query projection (w_q pre-scaled by 1/sqrt(H)) ---- (T, H)
    q = jnp.dot(tgt_emb_ref[...], w_q_ref[...],
                preferred_element_type=jnp.float32)

    # ---- attention: contract last axes directly (no explicit .T) ----
    # TODO(synk): no source-length/padding mask — fixed-length batches only.
    enc_b = enc.astype(bf16)
    scores = jnp.einsum("td,sd->ts", q.astype(bf16), enc_b,
                        preferred_element_type=jnp.float32)          # (T, S)
    scores = scores - jnp.max(scores, axis=-1, keepdims=True)
    e = jnp.exp(scores)
    attn = e * pl.reciprocal(jnp.sum(e, axis=-1, keepdims=True), approx=True)
    ctx = jnp.dot(attn.astype(bf16), enc_b,
                  preferred_element_type=jnp.float32)                # (T, H)

    # ---- combine: [ctx ; q] @ [w_c ; w_h] — single K=2H=256 MXU push ----
    # (v5e note: its MXU is 128-deep, so there prefer two K=128 dots into one
    #  f32 accumulator: tanh(ctx @ w_ch[:H] + q @ w_ch[H:] + b) — no concat.)
    cq = jnp.concatenate([ctx, q], axis=-1).astype(bf16)             # (T, 2H)
    h = jnp.tanh(
        jnp.dot(cq, w_ch_ref[...],
                preferred_element_type=jnp.float32) + b_dec_ref[...])  # (T, H)

    # ---- generator (lane-dense V output, bf16 store -> half the writeback) ----
    out_ref[...] = (jnp.dot(h.astype(bf16), w_gen_ref[...],
                            preferred_element_type=jnp.float32)
                    + b_gen_ref[...]).astype(out_ref.dtype)          # (T, V)


# ------------------------------- parameters -------------------------------- #
def init_params(key, vocab=256, emb=128, hidden=128):
    ks = jax.random.split(key, 8)
    s = lambda k, shape, scale: (scale * jax.random.normal(k, shape)).astype(jnp.float32)
    w_c = s(ks[4], (hidden, hidden), 1.0 / math.sqrt(hidden))
    w_h = s(ks[5], (hidden, hidden), 1.0 / math.sqrt(hidden))
    return {
        # kernel-ready packing done once, at init time:
        #   * bf16 weights (f32 accumulation in-kernel)
        #   * attention scale 1/sqrt(H) folded into w_q (scaled-dot attention
        #     by design of this concrete decoder)
        #   * w_c / w_h stacked into one (2H, H) weight
        "src_embed": s(ks[0], (vocab, emb), 0.02).astype(jnp.bfloat16),
        "tgt_embed": s(ks[1], (vocab, emb), 0.02).astype(jnp.bfloat16),
        "w_enc": s(ks[2], (emb, hidden), 1.0 / math.sqrt(emb)).astype(jnp.bfloat16),
        "b_enc": jnp.zeros((1, hidden), jnp.float32),
        "w_q": (s(ks[3], (emb, hidden), 1.0 / math.sqrt(emb))
                * (1.0 / math.sqrt(hidden))).astype(jnp.bfloat16),
        "w_ch": jnp.concatenate([w_c, w_h], axis=0).astype(jnp.bfloat16),
        "b_dec": jnp.zeros((1, hidden), jnp.float32),
        "w_gen": s(ks[6], (hidden, vocab), 1.0 / math.sqrt(hidden)).astype(jnp.bfloat16),
        "b_gen": jnp.zeros((1, vocab), jnp.float32),
    }


# ------------------------------- NMT forward ------------------------------- #
def nmt_model_forward(params, source, target):
    # NMTModel.forward:
    #   attn_src, attn_inputs = encoder(source)
    #   out = decoder(source, attn_src, target)
    # (encoder + attention decoder + generator fused into one pallas_call;
    #  attn_inputs is unused downstream)
    B, S = source.shape
    _, T = target.shape
    V, E = params["src_embed"].shape
    H = params["w_enc"].shape[1]

    # Embedding lookup as a real XLA gather outside the kernel (bf16 rows).
    # Replaces the one-hot matmul: no O(B*S*V*E) MXU work, no (V,E) tables in
    # VMEM, no (M,V) one-hot intermediate.
    src_emb = jnp.take(params["src_embed"], source.astype(jnp.int32), axis=0)  # (B,S,E)
    tgt_emb = jnp.take(params["tgt_embed"], target.astype(jnp.int32), axis=0)  # (B,T,E)

    # Per-batch blocks (leading axis squeezed) vs. grid-invariant weights.
    per_batch = lambda rows, cols: pl.BlockSpec((None, rows, cols),
                                                lambda b: (b, 0, 0))
    resident = lambda shape: pl.BlockSpec(shape, lambda b: (0,) * len(shape))

    # Advisory cost model for XLA's scheduler around the custom call.
    flops = 2 * B * (S * E * H          # encoder
                     + T * E * H        # query projection
                     + 2 * T * S * H    # scores + context
                     + T * (2 * H) * H  # combine
                     + T * H * V)       # generator
    transcendentals = B * (S * H + T * H + T * S)        # tanh + tanh + exp
    bytes_accessed = ((B * S * E + B * T * E) * 2                      # embeddings in
                      + (2 * E * H + 2 * H * H + H * V) * 2            # bf16 weights
                      + (2 * H + V) * 4                                # f32 biases
                      + B * T * V * 2)                                 # bf16 logits out

    out = pl.pallas_call(
        _nmt_fused_kernel,
        out_shape=jax.ShapeDtypeStruct((B, T, V), jnp.bfloat16),
        grid=(B,),                       # sharded across TCs on v7x (parallel)
        in_specs=[
            per_batch(S, E),             # src_emb[b]
            per_batch(T, E),             # tgt_emb[b]
            resident((E, H)),            # w_enc       (VMEM-resident across grid)
            resident((1, H)),            # b_enc
            resident((E, H)),            # w_q (pre-scaled)
            resident((2 * H, H)),        # w_ch = [w_c ; w_h]
            resident((1, H)),            # b_dec
            resident((H, V)),            # w_gen  (tile over V at production vocab)
            resident((1, V)),            # b_gen
        ],
        out_specs=per_batch(T, V),
        compiler_params=pltpu.CompilerParams(
            dimension_semantics=("parallel",)),
        cost_estimate=pl.CostEstimate(flops=flops,
                                      transcendentals=transcendentals,
                                      bytes_accessed=bytes_accessed),
    )(src_emb, tgt_emb,
      params["w_enc"], params["b_enc"],
      params["w_q"], params["w_ch"], params["b_dec"],
      params["w_gen"], params["b_gen"])
    return out                           # (B, T, V) bf16 logits


if __name__ == "__main__":
    key = jax.random.PRNGKey(0)
    kp, ks, kt = jax.random.split(key, 3)

    B, S_SRC, S_TGT, VOCAB = 2, 16, 8, 256
    params = init_params(kp, vocab=VOCAB, emb=128, hidden=128)

    source = jax.random.randint(ks, (B, S_SRC), 0, VOCAB, dtype=jnp.int32)
    target = jax.random.randint(kt, (B, S_TGT), 0, VOCAB, dtype=jnp.int32)

    out = nmt_model_forward(params, source, target)
    jax.block_until_ready(out)
    assert out.shape == (B, S_TGT, VOCAB), out.shape
    assert jnp.all(jnp.isfinite(out.astype(jnp.float32)))
    print("KERNEL_OK")
</pallas_src>

<mosaic_0001>
module attributes {stable_mosaic.version = 11 : i64} {
  func.func @_nmt_fused_kernel(%arg0: i32, %arg1: memref<1x16x128xbf16, #tpu.memory_space<vmem>>, %arg2: memref<1x8x128xbf16, #tpu.memory_space<vmem>>, %arg3: memref<128x128xbf16, #tpu.memory_space<vmem>>, %arg4: memref<1x128xf32, #tpu.memory_space<vmem>>, %arg5: memref<128x128xbf16, #tpu.memory_space<vmem>>, %arg6: memref<256x128xbf16, #tpu.memory_space<vmem>>, %arg7: memref<1x128xf32, #tpu.memory_space<vmem>>, %arg8: memref<128x256xbf16, #tpu.memory_space<vmem>>, %arg9: memref<1x256xf32, #tpu.memory_space<vmem>>, %arg10: memref<1x8x256xbf16, #tpu.memory_space<vmem>>) attributes {dimension_semantics = [#tpu.dimension_semantics<parallel>], iteration_bounds = array<i64: 2>, scalar_prefetch = 0 : i64, scratch_operands = 0 : i64, tpu.core_type = #tpu.core_type<tc>, window_params = [{transform_indices = @transform_0, window_bounds = array<i64: 1, 16, 128>}, {transform_indices = @transform_1, window_bounds = array<i64: 1, 8, 128>}, {pipeline_mode = #tpu.pipeline_mode<synchronous>, transform_indices = @transform_2, window_bounds = array<i64: 128, 128>}, {pipeline_mode = #tpu.pipeline_mode<synchronous>, transform_indices = @transform_3, window_bounds = array<i64: 1, 128>}, {pipeline_mode = #tpu.pipeline_mode<synchronous>, transform_indices = @transform_4, window_bounds = array<i64: 128, 128>}, {pipeline_mode = #tpu.pipeline_mode<synchronous>, transform_indices = @transform_5, window_bounds = array<i64: 256, 128>}, {pipeline_mode = #tpu.pipeline_mode<synchronous>, transform_indices = @transform_6, window_bounds = array<i64: 1, 128>}, {pipeline_mode = #tpu.pipeline_mode<synchronous>, transform_indices = @transform_7, window_bounds = array<i64: 128, 256>}, {pipeline_mode = #tpu.pipeline_mode<synchronous>, transform_indices = @transform_8, window_bounds = array<i64: 1, 256>}, {transform_indices = @transform_9, window_bounds = array<i64: 1, 8, 256>}]} {
    %c0 = arith.constant 0 : index
    %c0_0 = arith.constant 0 : index
    %c0_1 = arith.constant 0 : index
    %0 = vector.load %arg1[%c0, %c0_0, %c0_1] : memref<1x16x128xbf16, #tpu.memory_space<vmem>>, vector<1x16x128xbf16>
    %1 = vector.shape_cast %0 : vector<1x16x128xbf16> to vector<16x128xbf16>
    %c0_2 = arith.constant 0 : index
    %c0_3 = arith.constant 0 : index
    %2 = vector.load %arg3[%c0_2, %c0_3] : memref<128x128xbf16, #tpu.memory_space<vmem>>, vector<128x128xbf16>
    %cst = arith.constant dense<0.000000e+00> : vector<16x128xf32>
    %3 = tpu.matmul %1, %2, %cst {dimension_numbers = #tpu.dot_dimension_numbers<[1], [0], [0], [1], [0, 0, 1, 1], [], []>} : vector<16x128xbf16>, vector<128x128xbf16>, vector<16x128xf32> -> vector<16x128xf32>
    %c0_4 = arith.constant 0 : index
    %c0_5 = arith.constant 0 : index
    %4 = vector.load %arg4[%c0_4, %c0_5] : memref<1x128xf32, #tpu.memory_space<vmem>>, vector<1x128xf32>
    %5 = vector.broadcast %4 : vector<1x128xf32> to vector<16x128xf32>
    %6 = arith.addf %3, %5 : vector<16x128xf32>
    %7 = math.tanh %6 : vector<16x128xf32>
    %c0_6 = arith.constant 0 : index
    %c0_7 = arith.constant 0 : index
    %c0_8 = arith.constant 0 : index
    %8 = vector.load %arg2[%c0_6, %c0_7, %c0_8] : memref<1x8x128xbf16, #tpu.memory_space<vmem>>, vector<1x8x128xbf16>
    %9 = vector.shape_cast %8 : vector<1x8x128xbf16> to vector<8x128xbf16>
    %c0_9 = arith.constant 0 : index
    %c0_10 = arith.constant 0 : index
    %10 = vector.load %arg5[%c0_9, %c0_10] : memref<128x128xbf16, #tpu.memory_space<vmem>>, vector<128x128xbf16>
    %cst_11 = arith.constant dense<0.000000e+00> : vector<8x128xf32>
    %11 = tpu.matmul %9, %10, %cst_11 {dimension_numbers = #tpu.dot_dimension_numbers<[1], [0], [0], [1], [0, 0, 1, 1], [], []>} : vector<8x128xbf16>, vector<128x128xbf16>, vector<8x128xf32> -> vector<8x128xf32>
    %12 = arith.truncf %7 : vector<16x128xf32> to vector<16x128xbf16>
    %13 = arith.truncf %11 : vector<8x128xf32> to vector<8x128xbf16>
    "tpu.trace_start"() <{level = 10 : i32, message = "td,sd->ts"}> : () -> ()
    %cst_12 = arith.constant dense<0.000000e+00> : vector<8x16xf32>
    %14 = tpu.matmul %13, %12, %cst_12 {dimension_numbers = #tpu.dot_dimension_numbers<[1], [1], [0], [0], [0, 0, 1, 0], [], []>} : vector<8x128xbf16>, vector<16x128xbf16>, vector<8x16xf32> -> vector<8x16xf32>
    "tpu.trace_stop"() : () -> ()
    %cst_13 = arith.constant dense<0xFF800000> : vector<8xf32>
    %15 = vector.multi_reduction <maximumf>, %14, %cst_13 [1] : vector<8x16xf32> to vector<8xf32>
    %16 = vector.shape_cast %15 : vector<8xf32> to vector<8x1xf32>
    %17 = vector.broadcast %16 : vector<8x1xf32> to vector<8x16xf32>
    %18 = arith.subf %14, %17 : vector<8x16xf32>
    %19 = math.exp %18 : vector<8x16xf32>
    %cst_14 = arith.constant dense<0.000000e+00> : vector<8xf32>
    %20 = vector.multi_reduction <add>, %19, %cst_14 [1] : vector<8x16xf32> to vector<8xf32>
    %21 = vector.shape_cast %20 : vector<8xf32> to vector<8x1xf32>
    %22 = tpu.reciprocal %21 {approx = true} : vector<8x1xf32> -> vector<8x1xf32>
    %23 = vector.broadcast %22 : vector<8x1xf32> to vector<8x16xf32>
    %24 = arith.mulf %19, %23 : vector<8x16xf32>
    %25 = arith.truncf %24 : vector<8x16xf32> to vector<8x16xbf16>
    %cst_15 = arith.constant dense<0.000000e+00> : vector<8x128xf32>
    %26 = tpu.matmul %25, %12, %cst_15 {dimension_numbers = #tpu.dot_dimension_numbers<[1], [0], [0], [1], [0, 0, 1, 1], [], []>} : vector<8x16xbf16>, vector<16x128xbf16>, vector<8x128xf32> -> vector<8x128xf32>
    %27 = tpu.concatenate %26, %11 in 1 : vector<8x128xf32>, vector<8x128xf32> -> vector<8x256xf32>
    %28 = arith.truncf %27 : vector<8x256xf32> to vector<8x256xbf16>
    %c0_16 = arith.constant 0 : index
    %c0_17 = arith.constant 0 : index
    %29 = vector.load %arg6[%c0_16, %c0_17] : memref<256x128xbf16, #tpu.memory_space<vmem>>, vector<256x128xbf16>
    %cst_18 = arith.constant dense<0.000000e+00> : vector<8x128xf32>
    %30 = tpu.matmul %28, %29, %cst_18 {dimension_numbers = #tpu.dot_dimension_numbers<[1], [0], [0], [1], [0, 0, 1, 1], [], []>} : vector<8x256xbf16>, vector<256x128xbf16>, vector<8x128xf32> -> vector<8x128xf32>
    %c0_19 = arith.constant 0 : index
    %c0_20 = arith.constant 0 : index
    %31 = vector.load %arg7[%c0_19, %c0_20] : memref<1x128xf32, #tpu.memory_space<vmem>>, vector<1x128xf32>
    %32 = vector.broadcast %31 : vector<1x128xf32> to vector<8x128xf32>
    %33 = arith.addf %30, %32 : vector<8x128xf32>
    %34 = math.tanh %33 : vector<8x128xf32>
    %35 = arith.truncf %34 : vector<8x128xf32> to vector<8x128xbf16>
    %c0_21 = arith.constant 0 : index
    %c0_22 = arith.constant 0 : index
    %36 = vector.load %arg8[%c0_21, %c0_22] : memref<128x256xbf16, #tpu.memory_space<vmem>>, vector<128x256xbf16>
    %cst_23 = arith.constant dense<0.000000e+00> : vector<8x256xf32>
    %37 = tpu.matmul %35, %36, %cst_23 {dimension_numbers = #tpu.dot_dimension_numbers<[1], [0], [0], [1], [0, 0, 1, 1], [], []>} : vector<8x128xbf16>, vector<128x256xbf16>, vector<8x256xf32> -> vector<8x256xf32>
    %c0_24 = arith.constant 0 : index
    %c0_25 = arith.constant 0 : index
    %38 = vector.load %arg9[%c0_24, %c0_25] : memref<1x256xf32, #tpu.memory_space<vmem>>, vector<1x256xf32>
    %39 = vector.broadcast %38 : vector<1x256xf32> to vector<8x256xf32>
    %40 = arith.addf %37, %39 : vector<8x256xf32>
    %41 = arith.truncf %40 : vector<8x256xf32> to vector<8x256xbf16>
    %c0_26 = arith.constant 0 : index
    %c0_27 = arith.constant 0 : index
    %c0_28 = arith.constant 0 : index
    %42 = vector.load %arg10[%c0_26, %c0_27, %c0_28] : memref<1x8x256xbf16, #tpu.memory_space<vmem>>, vector<1x8x256xbf16>
    %43 = vector.shape_cast %42 : vector<1x8x256xbf16> to vector<8x256xbf16>
    %44 = vector.shape_cast %41 : vector<8x256xbf16> to vector<1x8x256xbf16>
    tpu.vector_store %arg10[%c0_26, %c0_27, %c0_28], %44 {strides = array<i32>} : memref<1x8x256xbf16, #tpu.memory_space<vmem>>, vector<1x8x256xbf16>,
    return
  }
  func.func @transform_0(%arg0: i32) -> (i32, i32, i32) {
    %c0_i32 = arith.constant 0 : i32
    %c0_i32_0 = arith.constant 0 : i32
    %c0_i32_1 = arith.constant 0 : i32
    return %arg0, %c0_i32, %c0_i32_0 : i32, i32, i32
  }
  func.func @transform_1(%arg0: i32) -> (i32, i32, i32) {
    %c0_i32 = arith.constant 0 : i32
    %c0_i32_0 = arith.constant 0 : i32
    %c0_i32_1 = arith.constant 0 : i32
    return %arg0, %c0_i32, %c0_i32_0 : i32, i32, i32
  }
  func.func @transform_2(%arg0: i32) -> (i32, i32) {
    %c0_i32 = arith.constant 0 : i32
    %c0_i32_0 = arith.constant 0 : i32
    %c0_i32_1 = arith.constant 0 : i32
    return %c0_i32, %c0_i32_0 : i32, i32
  }
  func.func @transform_3(%arg0: i32) -> (i32, i32) {
    %c0_i32 = arith.constant 0 : i32
    %c0_i32_0 = arith.constant 0 : i32
    %c0_i32_1 = arith.constant 0 : i32
    return %c0_i32, %c0_i32_0 : i32, i32
  }
  func.func @transform_4(%arg0: i32) -> (i32, i32) {
    %c0_i32 = arith.constant 0 : i32
    %c0_i32_0 = arith.constant 0 : i32
    %c0_i32_1 = arith.constant 0 : i32
    return %c0_i32, %c0_i32_0 : i32, i32
  }
  func.func @transform_5(%arg0: i32) -> (i32, i32) {
    %c0_i32 = arith.constant 0 : i32
    %c0_i32_0 = arith.constant 0 : i32
    %c0_i32_1 = arith.constant 0 : i32
    return %c0_i32, %c0_i32_0 : i32, i32
  }
  func.func @transform_6(%arg0: i32) -> (i32, i32) {
    %c0_i32 = arith.constant 0 : i32
    %c0_i32_0 = arith.constant 0 : i32
    %c0_i32_1 = arith.constant 0 : i32
    return %c0_i32, %c0_i32_0 : i32, i32
  }
  func.func @transform_7(%arg0: i32) -> (i32, i32) {
    %c0_i32 = arith.constant 0 : i32
    %c0_i32_0 = arith.constant 0 : i32
    %c0_i32_1 = arith.constant 0 : i32
    return %c0_i32, %c0_i32_0 : i32, i32
  }
  func.func @transform_8(%arg0: i32) -> (i32, i32) {
    %c0_i32 = arith.constant 0 : i32
    %c0_i32_0 = arith.constant 0 : i32
    %c0_i32_1 = arith.constant 0 : i32
    return %c0_i32, %c0_i32_0 : i32, i32
  }
  func.func @transform_9(%arg0: i32) -> (i32, i32, i32) {
    %c0_i32 = arith.constant 0 : i32
    %c0_i32_0 = arith.constant 0 : i32
    %c0_i32_1 = arith.constant 0 : i32
    return %arg0, %c0_i32, %c0_i32_0 : i32, i32, i32
  }
}

</mosaic_0001>

<bundles_post_ra>
// kernel: tpu_custom_call.1
= control target key start
LH: loop header
LB: loop body
LE: loop exit
PB: predicated region body
PF: predicated region fallthrough
CT: control target
= control target key end

     0   :  { %s2049_s0 = inlined_call_operand.hbm [shape: bf16[2,16,128], index: 0, kind: input, shape index: {}]   ;;  %s2050_s1 = inlined_call_operand.hbm [shape: bf16[2,8,128], index: 1, kind: input, shape index: {}]   ;;  %s2051_s2 = inlined_call_operand.hbm [shape: bf16[128,128], index: 2, kind: input, shape index: {}]   ;;  %s2052_s3 = inlined_call_operand.vmem [shape: f32[1,128], index: 3, kind: input, shape index: {}]   ;;  %s2053_s4 = inlined_call_operand.hbm [shape: bf16[128,128], index: 4, kind: input, shape index: {}]   ;;  %s2054_s5 = inlined_call_operand.hbm [shape: bf16[256,128], index: 5, kind: input, shape index: {}]   ;;  %s2055_s6 = inlined_call_operand.vmem [shape: f32[1,128], index: 6, kind: input, shape index: {}]   ;;  %s2056_s7 = inlined_call_operand.hbm [shape: bf16[128,256], index: 7, kind: input, shape index: {}]   ;;  %s2057_s8 = inlined_call_operand.vmem [shape: f32[1,256], index: 8, kind: input, shape index: {}]   ;;  %s2058_s9 = inlined_call_operand.hbm [shape: bf16[2,8,256], index: 9, kind: output, shape index: {}]  }
   0x1   :  { %2065 = sst [smem:[#allocation24_spill]] %s2051_s2 }
   0x2   :  { %2066 = sst [smem:[#allocation25_spill]] %s2053_s4 }
   0x3   :  { %2067 = sst [smem:[#allocation26_spill]] %s2054_s5 }
   0x4   :  { %2068 = sst [smem:[#allocation27_spill]] %s2056_s7 }
   0x5   :  { %14 = vsyncpa [#allocation3], 0 }
   0x6   :  { %16 = vsyncpa [#allocation3 + $0x1], 0 }
   0x7   :  { %17 = vsyncpa [#allocation6], 0 }
   0x8   :  { %19 = vsyncpa [#allocation6 + $0x1], 0 }
   0x9   :  { %20 = vsyncpa [#allocation9], 0 }
   0xa   :  { %21 = vsyncpa [#allocation12], 0 }
   0xb   :  { %22 = vsyncpa [#allocation4], 0 }
   0xc   :  { %24 = vsyncpa [#allocation4 + $0x1], 0  ;;  %s1815_s30 = smov 0   ;;  %s1817_s10 = smov 0  }
   0xd   :  { %s1819_s11 = smov 0   ;;  %s1821_s12 = smov 0  }
   0xe LB: > { %2069 = sst [smem:[#allocation20_spill]] %s1751_s11  ;;  %s1836_s13 = sadd.s32 4294967295, %s1755_s12   ;;  %s1755_s12 = sphi %s1821_s12, %s2087_s12   ;;  %s1751_s11 = sphi %s1819_s11, %s2089_s11   ;;  %s1747_s10 = sphi %s1817_s10, %s2091_s10   ;;  %s1743_s30 = sphi %s1815_s30, %s2090_s30  }
   0xf   : > { %s1112_s14 = sadd.s32 4294967294, %s1755_s12   ;;  %p50_p0 = scmp.ne.s32.totalorder %s1747_s10, %s1743_s30 }
  0x10   : > { %p51_p1 = scmp.eq.s32.totalorder %s1836_s13, 0  ;;  %p247_p2 = scmp.eq.s32.totalorder %s1836_s13, 1 }
  0x11   : > { %p253_p3 = scmp.eq.s32.totalorder %s1112_s14, 1  ;;  %p1113_p5 = scmp.ge.s32.totalorder %s1755_s12, 1 }
  0x12   : > { %p1845_p4 = por %p51_p1, %p50_p0  ;;  %p260_p7 = scmp.lt.s32.totalorder %s1755_s12, 3 }
  0x13   : > { %p1850_p6 = por %p253_p3, %p50_p0  ;;  %s2073_s2 = sld [smem:[#allocation24_spill]] }
  0x14   : > { %p1858_p8 = pnand %p1113_p5, %p260_p7  ;;  %s1757_s21 = smov [#allocation7]  }
  0x15   : > { %s2071_s16 = scalar_select %p1850_p6, 1, 0 }
  0x16   : > { %p1407_p9 = pneg %p1858_p8  ;;  %s273_s22 = sshll.u32 %s1757_s21, 4  ;;  %s274_s22 = int_to_ptr.vmem [resolvable:$true] %s273_s22 }
  0x17   : > { %2072 = sst [smem:[#allocation21_spill]] %s2071_s16  ;;  %s2059_s27 = smov 64  }
  0x18   : > { %p1866_p10 = pnand %p1407_p9, %p51_p1  ;;  %s2076_s4 = sld [smem:[#allocation25_spill]] }
  0x19   : > { %s271_s19 = sshll.u32 %s2073_s2, 4  ;;  %s2060_s28 = smov 4   ;;  %s272_s19 = int_to_ptr.hbm [resolvable:$true] %s271_s19 }
  0x1a   : > { %1410 = dma.hbm_to_vmem [thread:$0]  (!%p1866_p10), %s272_s19, 1024, %s274_s22, [#allocation6], %s2059_s27, %s2059_s27, %s2060_s28  }
  0x1b   : > { %s1760_s29 = smov [#allocation8]   ;;  %s2077_s5 = sld [smem:[#allocation26_spill]] }
  0x1c   : > { %s290_s14 = sshll.u32 %s1760_s29, 4  ;;  %s2078_s7 = sld [smem:[#allocation27_spill]]  ;;  %s291_s14 = int_to_ptr.vmem [resolvable:$true] %s290_s14 }
  0x1d   : > { %s1761_s22 = smov [#allocation10]   ;;  %s1763_s17 = smov 128  }
  0x1e   : > { %s288_s26 = sshll.u32 %s2076_s4, 4  ;;  %s304_s29 = sshll.u32 %s1761_s22, 4  ;;  %s289_s26 = int_to_ptr.hbm [resolvable:$true] %s288_s26  ;;  %s305_s29 = int_to_ptr.vmem [resolvable:$true] %s304_s29 }
  0x1f   : > { %1413 = dma.hbm_to_vmem [thread:$0]  (!%p1866_p10), %s289_s26, 1024, %s291_s14, [#allocation9], %s2059_s27, %s2059_s27, %s2060_s28  }
  0x20   : > { %s1762_s26 = smov [#allocation11]   ;;  %s1764_s18 = smov 8  }
  0x21   : > { %s302_s21 = sshll.u32 %s2077_s5, 4  ;;  %s321_s14 = sshll.u32 %s1762_s26, 4  ;;  %s303_s21 = int_to_ptr.hbm [resolvable:$true] %s302_s21  ;;  %s322_s14 = int_to_ptr.vmem [resolvable:$true] %s321_s14 }
  0x22   : > { %s319_s19 = sshll.u32 %s2078_s7, 4  ;;  %s1898_s24 = sadd.s32 1, %s1755_s12   ;;  %s320_s19 = int_to_ptr.hbm [resolvable:$true] %s319_s19 }
  0x23   : > { %1416 = dma.hbm_to_vmem [thread:$0]  (!%p1866_p10), %s303_s21, 2048, %s305_s29, [#allocation9], %s2059_s27, %s2059_s27, %s2060_s28  }
  0x24   : > { %1419 = dma.hbm_to_vmem [thread:$0]  (!%p1866_p10), %s320_s19, 2048, %s322_s14, [#allocation12], %s1763_s17, %s1763_s17, %s1764_s18  }
  0x25   : > { %2079 = sst [smem:[#allocation22_spill]] %s1898_s24  ;;  %s34_s25 = ssub.s32 %s1755_s12, %s1898_s24 }
  0x26   : > { %p35_p12 = scmp.eq.s32.totalorder %s34_s25, 0  ;;  %s37_s22 = sadd.s32 1, %s1751_s11 }
  0x27   : > { %p44_p13 = scmp.ne.s32.totalorder %s1751_s11, %s1747_s10  ;;  %p45_p0 = scmp.eq.s32.totalorder %s1755_s12, 0 }
  0x28   : > { %s1907_s21 = scalar_select %p35_p12, %s1751_s11, %s37_s22  }
  0x29   : > { %p46_p3 = por %p45_p0, %p44_p13  ;;  %p1911_p5 = por %p247_p2, %p44_p13 }
  0x2a   : > { %2080 = sst [smem:[#allocation23_spill]] %s1907_s21  ;;  %p1435_p7 = scmp.lt.s32.totalorder %s1755_s12, 2 }
  0x2b   : > { %s1917_s23 = sand.u32 1, %s1751_s11   ;;  %s1334_s26 = sshll.u32 %s1755_s12, 3 }
  0x2c   : > { %s1119_s19 = sshll.u32 %s1917_s23, 3  ;;  %s347_s18 = scalar_lea.hbm %s2049_s0, %s1334_s26 }
  0x2d   : > { %s342_s25 = scalar_lea.vmem [#allocation2], %s1119_s19  ;;  %s348_s27 = sshll.u32 %s347_s18, 4  ;;  %s349_s27 = int_to_ptr.hbm [resolvable:$true] %s348_s27 }
  0x2e   : > { %s350_s22 = sshll.u32 %s342_s25, 4  ;;  %p1924_p2 = pnand %p1435_p7, %p46_p3  ;;  %s351_s22 = int_to_ptr.vmem [resolvable:$true] %s350_s22 }
  0x2f   : > { %s360_s2 = sand.u32 1, %s1755_s12   ;;  %s1122_s4 = sshll.u32 %s1917_s23, 2 }
  0x30   : > { %s339_s5 = scalar_lea.sflag [#allocation3], %s1917_s23  ;;  %s1613_s7 = sshra.s32 %s349_s27, 4  ;;  %s1614_s7 = int_to_ptr.hbm [resolvable:$true] %s1613_s7 }
  0x31   : > { %s1615_s21 = scalar_lea.hbm %s1614_s7, 8  ;;  %p1617_p10 = pneg %p1924_p2 }
  0x32   : > { %p1616_p9 = scmp.ne.s32.totalorder %s1614_s7, %s1615_s21  ;;  %s1620_s14 = scalar_lea.hbm %s2049_s0, 16 }
  0x33   : > { %p1621_p0 = scmp.lt.s32.totalorder %s1614_s7, %s2049_s0  ;;  %p1622_p3 = scmp.lt.s32.totalorder %s1620_s14, %s1615_s21 }
  0x34   : > { %p1618_p12 = pnand %p1617_p10, %p1616_p9 }
  0x35   : > { %p1623_p7 = por %p1622_p3, %p1621_p0 }
  0x36   : > { %p1619_p13 = pneg %p1618_p12 }
  0x38   : > { %p1624_p11 = pnand %p1623_p7, %p1619_p13 }
  0x3a   : > { %1627 = shalt.err (!%p1624_p11)
}
  0x3b   : > { %s2083_s23 = smov 4   ;;  %s2084_s25 = smov 64  }
  0x3c   : > { %1423 = dma.hbm_to_vmem [thread:$0]  (!%p1924_p2), %s349_s27, 128, %s351_s22, %s339_s5, %s2084_s25, %s2084_s25, %s2083_s23  }
  0x3d   : > { %s1123_s11 = sshll.u32 %s1755_s12, 2  ;;  %s364_s16 = scalar_lea.vmem [#allocation5], %s1122_s4 }
  0x3e   : > { %s368_s26 = scalar_lea.hbm %s2050_s1, %s1123_s11  ;;  %s372_s17 = sshll.u32 %s364_s16, 4  ;;  %s373_s17 = int_to_ptr.vmem [resolvable:$true] %s372_s17 }
  0x3f   : > { %s370_s7 = sshll.u32 %s368_s26, 4  ;;  %s361_s21 = scalar_lea.sflag [#allocation6], %s360_s2  ;;  %s371_s7 = int_to_ptr.hbm [resolvable:$true] %s370_s7 }
  0x40   : > { %s1643_s14 = sshra.s32 %s371_s7, 4  ;;  %s1650_s22 = scalar_lea.hbm %s2050_s1, 8  ;;  %s1644_s14 = int_to_ptr.hbm [resolvable:$true] %s1643_s14 }
  0x41   : > { %s1645_s18 = scalar_lea.hbm %s1644_s14, 4  ;;  %p1651_p13 = scmp.lt.s32.totalorder %s1644_s14, %s2050_s1 }
  0x42   : > { %p1646_p11 = scmp.ne.s32.totalorder %s1644_s14, %s1645_s18  ;;  %p1652_p0 = scmp.lt.s32.totalorder %s1650_s22, %s1645_s18 }
  0x44   : > { %p1648_p9 = pnand %p1646_p11, %p1617_p10  ;;  %p1653_p3 = por %p1652_p0, %p1651_p13 }
  0x46   : > { %p1649_p12 = pneg %p1648_p9 }
  0x48   : > { %p1654_p7 = pnand %p1653_p3, %p1649_p12 }
  0x4a   : > { %1657 = shalt.err (!%p1654_p7)
}
  0x4b   : > { %1426 = dma.hbm_to_vmem [thread:$0]  (!%p1924_p2), %s371_s7, 64, %s373_s17, %s361_s21  }
  0x4c   : > { %381 = sbr.rel (%p1858_p8) target bundleno = 1076 (0x434), region = 56  ;;  %s1965_s2 = sand.u32 (!%p1858_p8), 1, %s1747_s10  }
  0x4d   : > { %s1125_s4 = sshll.u32 (!%p1858_p8), %s1965_s2, 3  ;;  %s384_s16 = scalar_lea.sflag (!%p1858_p8), [#allocation3], %s1965_s2 }
  0x4e   : > { %s1971_s23 = scalar_lea.vmem (!%p1858_p8), [#allocation2], %s1125_s4 }
  0x51   : > { %1718 = dma.done.wait (%p1845_p4), %s384_s16, 128  }
  0x52   : > { %1720 = vsyncadd (%p1845_p4), %s384_s16, 4294967168  ;;  %s393_s20 = sand.u32 1, %s1836_s13   ;;  %s1126_s28 = sshll.u32 %s1965_s2, 2 }
  0x53   : > { %s394_s25 = scalar_lea.sflag [#allocation6], %s393_s20  ;;  %s1979_s19 = scalar_lea.vmem [#allocation5], %s1126_s28 }
  0x54   : > { %1722 = dma.done.wait (%p1845_p4), %s394_s25, 64  }
  0x55   : > { %1724 = vsyncadd (%p1845_p4), %s394_s25, 4294967232 }
  0x56   : > { %1726 = dma.done.wait (%p51_p1), [#allocation6], 1024  }
  0x57   : > { %1728 = vsyncadd (%p51_p1), [#allocation6], 4294966272 }
  0x58   : > { %1730 = dma.done.wait (%p51_p1), [#allocation9], 3072  }
  0x59   : > { %1732 = vsyncadd (%p51_p1), [#allocation9], 4294964224 }
  0x5a   : > { %1734 = dma.done.wait (%p51_p1), [#allocation12], 2048  }
  0x5b   : > { %1736 = vsyncadd (%p51_p1), [#allocation12], 4294965248  ;;  %v1343_v0 = vld [vmem:[#allocation7 + $0x38] sm:$0xff]  ;;  %v1342_v2 = vld [vmem:[#allocation7 + $0x30] sm:$0xff]  ;;  %vm644_vm0 = vcmask 130048   ;;  %s1384_s18 = sshll.u32 %s1836_s13, 3 }
  0x5c   : > { %v1351_v1 = vld [vmem:[#allocation8 + $0x38] sm:$0xff]  ;;  %535 = vmatpush.bf16.msra.mxu0 %v1343_v0  ;;  %v1350_v3 = vld [vmem:[#allocation8 + $0x30] sm:$0xff]  ;;  %v1341_v4 = vld [vmem:[#allocation7 + $0x28] sm:$0xff]  ;;  %s976_s22 = scalar_lea.hbm %s2058_s9, %s1384_s18  ;;  %s457_s24 = scalar_lea.vmem [#allocation13], %s1125_s4 }
  0x5d   : > { %616 = vmatpush.bf16.msra.mxu1 %v1351_v1  ;;  %v1349_v5 = vld [vmem:[#allocation8 + $0x28] sm:$0xff]  ;;  %v1340_v6 = vld [vmem:[#allocation7 + $0x20] sm:$0xff]  ;;  %v1339_v8 = vld [vmem:[#allocation7 + $0x18] sm:$0xff]  ;;  %s978_s11 = sshll.u32 %s457_s24, 4  ;;  %s980_s16 = sshll.u32 %s976_s22, 4  ;;  %s979_s11 = int_to_ptr.vmem [resolvable:$true] %s978_s11  ;;  %s981_s16 = int_to_ptr.hbm [resolvable:$true] %s980_s16 }
  0x5e   : > { %v1348_v7 = vld [vmem:[#allocation8 + $0x20] sm:$0xff]  ;;  %v1347_v9 = vld [vmem:[#allocation8 + $0x18] sm:$0xff]  ;;  %v1338_v10 = vld [vmem:[#allocation7 + $0x10] sm:$0xff]  ;;  %s965_s13 = scalar_lea.sflag [#allocation4], %s1965_s2  ;;  %s1693_s4 = scalar_lea.hbm %s2058_s9, 16 }
  0x5f   : > { %v1346_v11 = vld [vmem:[#allocation8 + $0x10] sm:$0xff]  ;;  %v1337_v12 = vld [vmem:[#allocation7 + $0x8] sm:$0xff]  ;;  %v1336_v14 = vld [vmem:[#allocation7] sm:$0xff] }
  0x60   : > { %536 = vmatpush.bf16.msra.mxu0 %v1342_v2  ;;  %v1345_v13 = vld [vmem:[#allocation8 + $0x8] sm:$0xff]  ;;  %v1344_v15 = vld [vmem:[#allocation8] sm:$0xff]  ;;  %v551_v17 = vld [vmem:[%s1979_s19] sm:$0xf] }
  0x61   : > { %617 = vmatpush.bf16.msra.mxu1 %v1350_v3  ;;  %v1335_v16 = vld [vmem:[%s1971_s23] sm:$0xff]  ;;  %v1367_v27 = vld [vmem:[#allocation10 + $0x78] sm:$0xff]  ;;  %v1364_v32 = vld [vmem:[#allocation10 + $0x60] sm:$0xff]  ;;  %s1687_s23 = sshra.s32 %s981_s16, 4  ;;  %s1688_s23 = int_to_ptr.hbm [resolvable:$true] %s1687_s23 }
  0x62   : > { %v1481_v20 = vld [vmem:[%s2052_s3] ss:$0 sm:$0xff]  ;;  %v1366_v29 = vld [vmem:[#allocation10 + $0x70] sm:$0xff]  ;;  %v1363_v33 = vld [vmem:[#allocation10 + $0x58] sm:$0xff]  ;;  %s1689_s20 = scalar_lea.hbm %s1688_s23, 8  ;;  %p1694_p2 = scmp.lt.s32.totalorder %s1688_s23, %s2058_s9 }
  0x63   : > { %v1365_v31 = vld [vmem:[#allocation10 + $0x68] sm:$0xff]  ;;  %v1362_v34 = vld [vmem:[#allocation10 + $0x50] sm:$0xff]  ;;  %v1360_v36 = vld [vmem:[#allocation10 + $0x40] sm:$0xff]  ;;  %p1690_p1 = scmp.ne.s32.totalorder %s1688_s23, %s1689_s20  ;;  %p1695_p10 = scmp.lt.s32.totalorder %s1693_s4, %s1689_s20 }
  0x64   : > { %537 = vmatpush.bf16.msra.mxu0 %v1341_v4  ;;  %v1361_v35 = vld [vmem:[#allocation10 + $0x48] sm:$0xff]  ;;  %v1359_v47 = vld [vmem:[#allocation10 + $0x38] sm:$0xff]  ;;  %v1358_v48 = vld [vmem:[#allocation10 + $0x30] sm:$0xff] }
  0x65   : > { %618 = vmatpush.bf16.msra.mxu1 %v1349_v5  ;;  %v1357_v49 = vld [vmem:[#allocation10 + $0x28] sm:$0xff]  ;;  %v1356_v50 = vld [vmem:[#allocation10 + $0x20] sm:$0xff]  ;;  %v1355_v51 = vld [vmem:[#allocation10 + $0x18] sm:$0xff]  ;;  %p1691_p4 = pnand %p1690_p1, %p1911_p5  ;;  %p1696_p11 = por %p1695_p10, %p1694_p2 }
  0x66   : > { %v1354_v52 = vld [vmem:[#allocation10 + $0x10] sm:$0xff]  ;;  %v1353_v54 = vld [vmem:[#allocation10 + $0x8] sm:$0xff]  ;;  %v1352_v58 = vld [vmem:[#allocation10] sm:$0xff] }
  0x67   : > { %v1323_v59 = vld [vmem:[#allocation11 + $0x70] sm:$0xf]  ;;  %v1383_v60 = vld [vmem:[#allocation11 + $0x74] sm:$0xf0]  ;;  %v1382_v61 = vld [vmem:[#allocation11 + $0x74] sm:$0xf]  ;;  %p1692_p8 = pneg %p1691_p4 }
  0x68   : > { %538 = vmatpush.bf16.msra.mxu0 %v1340_v6  ;;  %v1324_v62 = vor.u32 %v1383_v60, %v1323_v59  ;;  %v1325_v63 = vld [vmem:[#allocation11 + $0x78] sm:$0xf0]  ;;  %v1315_v0 = vld [vmem:[#allocation11 + $0x60] sm:$0xf]  ;;  %v1381_v1 = vld [vmem:[#allocation11 + $0x64] sm:$0xf0] }
  0x69   : > { %619 = vmatpush.bf16.msra.mxu1 %v1348_v7  ;;  %v1328_v2 = vor.u32 %v1382_v61, %v1325_v63  ;;  %v1380_v3 = vld [vmem:[#allocation11 + $0x64] sm:$0xf]  ;;  %v1317_v4 = vld [vmem:[#allocation11 + $0x68] sm:$0xf0]  ;;  %v1316_v5 = vor.u32 %v1381_v1, %v1315_v0  ;;  %v1307_v7 = vld [vmem:[#allocation11 + $0x50] sm:$0xf]  ;;  %p1697_p9 = pnand %p1696_p11, %p1692_p8 }
  0x6a   : > { %v1320_v6 = vor.u32 %v1380_v3, %v1317_v4 }
  0x6c   : > { %539 = vmatpush.bf16.msra.mxu0 %v1339_v8  ;;  %v1379_v8 = vld [vmem:[#allocation11 + $0x54] sm:$0xf0] }
  0x6d   : > { %620 = vmatpush.bf16.msra.mxu1 %v1347_v9  ;;  %v1378_v9 = vld [vmem:[#allocation11 + $0x54] sm:$0xf] }
  0x70   : > { %540 = vmatpush.bf16.msra.mxu0 %v1338_v10  ;;  %v1309_v10 = vld [vmem:[#allocation11 + $0x58] sm:$0xf0] }
  0x71   : > { %621 = vmatpush.bf16.msra.mxu1 %v1346_v11  ;;  %v1308_v11 = vor.u32 %v1379_v8, %v1307_v7 }
  0x74   : > { %541 = vmatpush.bf16.msra.mxu0 %v1337_v12  ;;  %v1312_v12 = vor.u32 %v1378_v9, %v1309_v10 }
  0x75   : > { %622 = vmatpush.bf16.msra.mxu1 %v1345_v13  ;;  %v1299_v13 = vld [vmem:[#allocation11 + $0x40] sm:$0xf] }
  0x78   : > { %542 = vmatpush.bf16.msra.mxu0 %v1336_v14  ;;  %v1377_v14 = vld [vmem:[#allocation11 + $0x44] sm:$0xf0] }
  0x79   : > { %623 = vmatpush.bf16.msra.mxu1 %v1344_v15  ;;  %v1376_v15 = vld [vmem:[#allocation11 + $0x44] sm:$0xf] }
  0x7b   : > { %543 = vmatmul.bf16.vlgmr.msra.gmra.mxu0 %v1335_v16  ;;  %v1301_v16 = vld [vmem:[#allocation11 + $0x48] sm:$0xf0] }
  0x7c   : > { %624 = vmatmul.bf16.vlgmr.msra.gmra.mxu1 %v551_v17  ;;  %936 = vmatpush.bf16.msrb.mxu0 %v1324_v62  ;;  %v1300_v17 = vor.u32 %v1377_v14, %v1299_v13 }
  0x7d   : > { %949 = vmatpush.bf16.msrb.mxu1 %v1328_v2 }
  0x80   : > { %937 = vmatpush.bf16.msrb.mxu0 %v1316_v5 }
  0x81   : > { %950 = vmatpush.bf16.msrb.mxu1 %v1320_v6 }
  0x84   : > { %938 = vmatpush.bf16.msrb.mxu0 %v1308_v11 }
  0x85   : > { %951 = vmatpush.bf16.msrb.mxu1 %v1312_v12 }
  0x88   : > { %939 = vmatpush.bf16.msrb.mxu0 %v1300_v17 }
  0xf8   : > { %v544_v18 = vpop.f32.mrf.mxu0 }
  0xf9   : > { %v625_v19 = vpop.f32.mrf.mxu1  ;;  %v545_v21 = vadd.f32 %v1481_v20, %v544_v18  ;;  %v1304_v18 = vor.u32 %v1376_v15, %v1301_v16 }
  0xfa   : > { %v630_v30 = vpack.c.bf16 %v625_v19, %v625_v19  ;;  %v1291_v19 = vld [vmem:[#allocation11 + $0x30] sm:$0xf] }
  0xfb   : > { %1483 = vtanh.f32 %v545_v21  ;;  %v1374_v21 = vld [vmem:[#allocation11 + $0x34] sm:$0xf]  ;;  %952 = vmatpush.bf16.msrb.mxu1 %v1304_v18 }
 0x100   : > { %v546_v22 = vpop.f32.mrf.mxu0 }
 0x101   : > { %v547_v23 = vadd.f32 %v1481_v20, %v546_v22  ;;  %v627_v24 = vpop.f32.mrf.mxu1  ;;  %v1484_v25 = vpop.eup %1483  ;;  %v1375_v20 = vld [vmem:[#allocation11 + $0x34] sm:$0xf0]  ;;  %v1293_v22 = vld [vmem:[#allocation11 + $0x38] sm:$0xf0] }
 0x102   : > { %v1296_v24 = vor.u32 %v1374_v21, %v1293_v22 }
 0x103   : > { %1485 = vtanh.f32 %v547_v23  ;;  %v1292_v23 = vor.u32 %v1375_v20, %v1291_v19 }
 0x104   : > { %953 = vmatpush.bf16.msrb.mxu1 %v1296_v24 }
 0x105   : > { %940 = vmatpush.bf16.msrb.mxu0 %v1292_v23 }
 0x109   : > { %v1486_v26 = vpop.eup %1485 }
 0x10a   : > { %v629_v28 = vpack.c.bf16 %v1486_v26, %v1484_v25 }
 0x10c   : > { %638 = vmatpush.bf16.xpose.msra.mxu2 %v629_v28  ;;  %667 = vmatpush.bf16.msra.mxu3 %v629_v28  ;;  %v1283_v28 = vld [vmem:[#allocation11 + $0x20] sm:$0xf] }
 0x110   : > { %806 = vmatpush.bf16.msrb.mxu3 %v1359_v47  ;;  %v1482_v47 = vld [vmem:[%s2055_s6] ss:$0 sm:$0xff] }
 0x113   : > { %639 = vmatmul.bf16.vlgmr.msra.gmra.mxu2 %v630_v30 }
 0x114   : > { %819 = vmatpush.bf16.msrb.mxu2 %v1367_v27  ;;  %807 = vmatpush.bf16.msrb.mxu3 %v1358_v48 }
 0x118   : > { %820 = vmatpush.bf16.msrb.mxu2 %v1366_v29  ;;  %808 = vmatpush.bf16.msrb.mxu3 %v1357_v49  ;;  %v1373_v29 = vld [vmem:[#allocation11 + $0x24] sm:$0xf0] }
 0x11c   : > { %821 = vmatpush.bf16.msrb.mxu2 %v1365_v31  ;;  %809 = vmatpush.bf16.msrb.mxu3 %v1356_v50  ;;  %v1284_v31 = vor.u32 %v1373_v29, %v1283_v28 }
 0x11e   : > { %941 = vmatpush.bf16.msrb.mxu0 %v1284_v31 }
 0x120   : > { %822 = vmatpush.bf16.msrb.mxu2 %v1364_v32  ;;  %810 = vmatpush.bf16.msrb.mxu3 %v1355_v51  ;;  %v1285_v32 = vld [vmem:[#allocation11 + $0x28] sm:$0xf0] }
 0x124   : > { %823 = vmatpush.bf16.msrb.mxu2 %v1363_v33  ;;  %811 = vmatpush.bf16.msrb.mxu3 %v1354_v52 }
 0x128   : > { %824 = vmatpush.bf16.msrb.mxu2 %v1362_v34  ;;  %812 = vmatpush.bf16.msrb.mxu3 %v1353_v54  ;;  %v1275_v34 = vld [vmem:[#allocation11 + $0x10] sm:$0xf]  ;;  %v850_v54 = vld [vmem:[%s2057_s8] sm:$0x3] }
 0x12c   : > { %825 = vmatpush.bf16.msrb.mxu2 %v1361_v35  ;;  %813 = vmatpush.bf16.msrb.mxu3 %v1352_v58  ;;  %v1371_v35 = vld [vmem:[#allocation11 + $0x14] sm:$0xf0] }
 0x130   : > { %826 = vmatpush.bf16.msrb.mxu2 %v1360_v36  ;;  %v1370_v36 = vld [vmem:[#allocation11 + $0x14] sm:$0xf] }
 0x133   : > { %827 = vmatmul.bf16.vlgmr.msrb.gmra.mxu2 %v630_v30  ;;  %v1372_v30 = vld [vmem:[#allocation11 + $0x24] sm:$0xf] }
 0x134   : > { %v1288_v33 = vor.u32 %v1372_v30, %v1285_v32 }
 0x136   : > { %954 = vmatpush.bf16.msrb.mxu1 %v1288_v33 }
 0x196   : > { %v640_v37 = vpop.f32.mrf.mxu2 }
 0x197   : > { %v645_v38 = vsel %vm644_vm0, %v640_v37, -inf }
 0x198   : > { %646 = vmax.xlane.f32.xlu0 %v645_v38  ;;  %v1277_v38 = vld [vmem:[#allocation11 + $0x18] sm:$0xf0] }
 0x19e   : > { %v642_v39 = vpop.f32.mrf.mxu2 }
 0x19f   : > { %v1280_v39 = vor.u32 %v1370_v36, %v1277_v38 }
 0x1a1   : > { %955 = vmatpush.bf16.msrb.mxu1 %v1280_v39 }
 0x1b6   : > { %v2003_v40 = vpop.f32.mrf.mxu2 }
 0x1be   : > { %v830_v41 = vpop.f32.mrf.mxu2 }
 0x1bf   : > { %v1267_v41 = vld [vmem:[#allocation11] sm:$0xf] }
 0x20b   : > { %v647_v42 = vpop.xlane.xlu0 %646 }
 0x20c   : > { %v648_v43 = vsub.f32 %v640_v37, %v647_v42  ;;  %v1276_v37 = vor.u32 %v1371_v35, %v1275_v34  ;;  %v1369_v42 = vld [vmem:[#allocation11 + $0x4] sm:$0xf0] }
 0x20e   : > { %v649_v44 = vmul.f32 1.442695, %v648_v43  ;;  %942 = vmatpush.bf16.msrb.mxu0 %v1276_v37  ;;  %v1368_v43 = vld [vmem:[#allocation11 + $0x4] sm:$0xf] }
 0x210   : > { %1487 = vpow2.f32 %v649_v44  ;;  %v1268_v44 = vor.u32 %v1369_v42, %v1267_v41 }
 0x212   : > { %943 = vmatpush.bf16.msrb.mxu0 %v1268_v44 }
 0x216   : > { %v1488_v45 = vpop.eup %1487 }
 0x217   : > { %v651_v46 = vsel %vm644_vm0, %v1488_v45, 0.0 }
 0x218   : > { %652 = vadd.xlane.f32.xlu0 %v651_v46 }
 0x28b   : > { %v653_v53 = vpop.xlane.xlu0 %652 }
 0x28c   : > { %1489 = vrcp.f32 %v653_v53 }
 0x292   : > { %v1490_v55 = vpop.eup %1489 }
 0x293   : > { %v655_v56 = vmul.f32 %v1490_v55, %v1488_v45  ;;  %v1269_v45 = vld [vmem:[#allocation11 + $0x8] sm:$0xf0]  ;;  %v852_v55 = vperm.slane %v850_v54, 0 }
 0x294   : > { %v1272_v46 = vor.u32 %v1368_v43, %v1269_v45 }
 0x295   : > { %v656_v57 = vpack.c.bf16 %v655_v56, %v655_v56  ;;  %v853_v56 = vperm.slane %v850_v54, 1 }
 0x296   : > { %956 = vmatpush.bf16.msrb.mxu1 %v1272_v46 }
 0x297   : > { %1200 = vmatmul.msk.bf16.vlgmr.msra.gmra.mxu3 %vm644_vm0, %v656_v57 }
 0x31a   : > { %v669_v25 = vpop.f32.mrf.mxu3 }
 0x31b   : > { %v673_v26 = vpack.c.bf16 %v669_v25, %v669_v25 }
 0x31d   : > { %814 = vmatmul.bf16.vlgmr.msrb.gmra.mxu3 %v673_v26 }
 0x322   : > { %v671_v27 = vpop.f32.mrf.mxu3 }
 0x3a0   : > { %v815_v48 = vpop.f32.mrf.mxu3 }
 0x3a1   : > { %v816_v49 = vadd.f32 %v1482_v47, %v815_v48 }
 0x3a3   : > { %v829_v50 = vadd.f32 %v2003_v40, %v816_v49 }
 0x3a5   : > { %1491 = vtanh.f32 %v829_v50 }
 0x3a8   : > { %v817_v51 = vpop.f32.mrf.mxu3 }
 0x3ab   : > { %v1492_v52 = vpop.eup %1491 }
 0x3ac   : > { %v833_v53 = vpack.c.bf16 %v1492_v52, %v1492_v52 }
 0x3ae   : > { %944 = vmatmul.bf16.vlgmr.msrb.gmra.mxu0 %v833_v53  ;;  %957 = vmatmul.bf16.vlgmr.msrb.gmra.mxu1 %v833_v53 }
 0x42b   : > { %v945_v57 = vpop.f32.mrf.mxu0  ;;  %v958_v40 = vpop.f32.mrf.mxu1 }
 0x42c   : > { %v946_v58 = vadd.f32 %v945_v57, %v852_v55  ;;  %v959_v59 = vadd.f32 %v958_v40, %v853_v56 }
 0x42e   : > { %v962_v60 = vpack.c.bf16 %v959_v59, %v946_v58 }
 0x430   : > { %963 = vst [vmem:[%s457_s24] sm:$0xff] %v962_v60 }
 0x431   : > { %1700 = shalt.err (!%p1697_p9)
}
 0x432   : > { %1405 = dma.vmem_to_hbm [thread:$0]  (%p1911_p5), %s979_s11, 128, %s981_s16, %s965_s13  }
 0x433   : > { %v947_v61 = vpop.f32.mrf.mxu0  ;;  %v960_v62 = vpop.f32.mrf.mxu1 }
 0x434 PF: > { %s992_s26 = sand.u32 1, %s1743_s30   ;;  %p2086_p12 = scmp.ge.s32.totalorder %s1755_s12, 2 }
 0x435   : > { %s993_s17 = scalar_lea.sflag [#allocation4], %s992_s26 }
 0x436   : > { %p1428_p13 = pnand %p2086_p12, %p1850_p6 }
 0x438   : > { %p1429_p0 = pneg %p1428_p13 }
 0x43a   : > { %1738 = dma.done.wait (%p1429_p0), %s993_s17, 128  }
 0x43b   : > { %1740 = vsyncadd (%p1429_p0), %s993_s17, 4294967168  ;;  %s2087_s12 = sld [smem:[#allocation22_spill]]  ;;  %s2090_s30 = smov %s1747_s10 }
 0x43c   : > { %s2088_s7 = sld [smem:[#allocation20_spill]] }
 0x43d   : > { %s2089_s11 = sld [smem:[#allocation23_spill]] }
 0x441   : > { %p27_p5 = scmp.ge.s32.totalorder %s2087_s12, 4  }
 0x442   : > { %s2091_s10 = smov %s2088_s7 }
 0x443   :  { %29 = sbr.rel (!%p27_p5) target bundleno = 14 (0xe), region = 130 }
 0x448   :  { %999 = vsyncpa [#allocation3], 1 }
 0x449   :  { %1001 = vsyncpa [#allocation3 + $0x1], 1 }
 0x44a   :  { %1002 = vsyncpa [#allocation6], 1 }
 0x44b   :  { %1004 = vsyncpa [#allocation6 + $0x1], 1 }
 0x44c   :  { %1005 = vsyncpa [#allocation9], 1 }
 0x44d   :  { %1006 = vsyncpa [#allocation12], 1 }
 0x44e   :  { %1007 = vsyncpa [#allocation4], 1 }
 0x44f   :  { %1009 = vsyncpa [#allocation4 + $0x1], 1 }

</bundles_post_ra>
